<compile_context>
chip_gen: v5e
topology: v5e:2x2
jax: 0.10.0
libtpu: 0.0.40
codegen_flags: <defaults>
</compile_context>

<pallas_src>
import functools

import jax
import jax.numpy as jnp
from jax import lax
from jax.experimental import pallas as pl
from jax.experimental.pallas import tpu as pltpu


def _round_up(x, m):
    return ((x + m - 1) // m) * m


def _lane_tile(D, max_lanes):
    """Largest lane tile (multiple of 128, dividing D) <= max_lanes."""
    if D <= max_lanes:
        return D
    t = (max_lanes // 128) * 128
    while t >= 128:
        if D % t == 0:
            return t
        t -= 128
    return D


def _seq_tile(L, max_rows=128):
    """Largest multiple of 8 dividing L, <= max_rows (fallback: full L)."""
    best = None
    t = 8
    while t <= min(L, max_rows):
        if L % t == 0:
            best = t
        t += 8
    return best if best is not None else L


# ----------------------------------------------------------------------------
# Fused linear kernels (bf16 MXU matmul, f32 accumulate, optional LN prologue)
# ----------------------------------------------------------------------------
def _apply_activation(y, activation):
    if activation == "silu":
        y = y * jax.nn.sigmoid(y)
    elif activation == "softplus":
        y = jnp.maximum(y, 0.0) + jnp.log(1.0 + jnp.exp(-jnp.abs(y)))
    return y


def _linear_kernel(x_ref, w_ref, b_ref, o_ref, *, activation):
    x = x_ref[...].astype(jnp.bfloat16)                 # bf16 operands -> MXU peak
    y = jnp.dot(x, w_ref[...], preferred_element_type=jnp.float32)
    y = y + b_ref[...]
    o_ref[...] = _apply_activation(y, activation).astype(o_ref.dtype)


def _ln_linear_kernel(x_ref, g_ref, bt_ref, w_ref, b_ref, o_ref, *, activation, eps):
    x = x_ref[...].astype(jnp.float32)                  # LN statistics in f32
    mu = jnp.mean(x, axis=-1, keepdims=True)
    var = jnp.mean(jnp.square(x - mu), axis=-1, keepdims=True)
    xn = (x - mu) * lax.rsqrt(var + eps) * g_ref[...] + bt_ref[...]
    y = jnp.dot(xn.astype(jnp.bfloat16), w_ref[...],
                preferred_element_type=jnp.float32)
    y = y + b_ref[...]
    o_ref[...] = _apply_activation(y, activation).astype(o_ref.dtype)


def pallas_linear(x, w_bf, b=None, activation=None, ln_gamma=None, ln_beta=None,
                  eps=1e-5, out_dtype=jnp.float32, block_rows=512):
    # Weights are pre-cast to bf16 once at parameter-preparation time.
    M, K = x.shape
    N = w_bf.shape[1]
    b2 = (jnp.zeros((1, N), jnp.float32) if b is None
          else jnp.asarray(b, jnp.float32).reshape(1, N))

    Mp = _round_up(M, 8)
    TM = min(Mp, block_rows)
    if Mp % TM:
        # Prefer a row tile that divides Mp (avoids padding the activation).
        div = [t for t in range(TM - 8, 63, -8) if Mp % t == 0]
        if div:
            TM = div[0]
        else:
            Mp = _round_up(Mp, TM)
    if Mp != M:
        x = jnp.pad(x, ((0, Mp - M), (0, 0)))

    if ln_gamma is None:
        kern = functools.partial(_linear_kernel, activation=activation)
        in_specs = [pl.BlockSpec((TM, K), lambda i: (i, 0)),
                    pl.BlockSpec((K, N), lambda i: (0, 0)),
                    pl.BlockSpec((1, N), lambda i: (0, 0))]
        args = (x, w_bf, b2)
    else:
        kern = functools.partial(_ln_linear_kernel, activation=activation, eps=eps)
        in_specs = [pl.BlockSpec((TM, K), lambda i: (i, 0)),
                    pl.BlockSpec((1, K), lambda i: (0, 0)),
                    pl.BlockSpec((1, K), lambda i: (0, 0)),
                    pl.BlockSpec((K, N), lambda i: (0, 0)),
                    pl.BlockSpec((1, N), lambda i: (0, 0))]
        args = (x, ln_gamma.reshape(1, K).astype(jnp.float32),
                ln_beta.reshape(1, K).astype(jnp.float32), w_bf, b2)

    out = pl.pallas_call(
        kern,
        out_shape=jax.ShapeDtypeStruct((Mp, N), out_dtype),
        grid=(Mp // TM,),
        in_specs=in_specs,
        out_specs=pl.BlockSpec((TM, N), lambda i: (i, 0)),
        compiler_params=pltpu.CompilerParams(dimension_semantics=("parallel",)),
    )(*args)
    return out[:M] if Mp != M else out


# ----------------------------------------------------------------------------
# LayerNorm (final norm_f)
# ----------------------------------------------------------------------------
def _layernorm_kernel(x_ref, g_ref, b_ref, o_ref, *, eps):
    x = x_ref[...].astype(jnp.float32)
    mu = jnp.mean(x, axis=-1, keepdims=True)
    var = jnp.mean(jnp.square(x - mu), axis=-1, keepdims=True)
    o_ref[...] = (x - mu) * lax.rsqrt(var + eps) * g_ref[...] + b_ref[...]


def pallas_layernorm(x, gamma, beta, eps=1e-5, block_rows=256):
    x = x.astype(jnp.float32)
    M, D = x.shape
    Mp = _round_up(M, 8)
    TM = min(Mp, block_rows)
    Mp = _round_up(Mp, TM)
    if Mp != M:
        x = jnp.pad(x, ((0, Mp - M), (0, 0)))
    out = pl.pallas_call(
        functools.partial(_layernorm_kernel, eps=eps),
        out_shape=jax.ShapeDtypeStruct((Mp, D), jnp.float32),
        grid=(Mp // TM,),
        in_specs=[pl.BlockSpec((TM, D), lambda i: (i, 0)),
                  pl.BlockSpec((1, D), lambda i: (0, 0)),
                  pl.BlockSpec((1, D), lambda i: (0, 0))],
        out_specs=pl.BlockSpec((TM, D), lambda i: (i, 0)),
        compiler_params=pltpu.CompilerParams(dimension_semantics=("parallel",)),
    )(x, gamma.reshape(1, D).astype(jnp.float32),
      beta.reshape(1, D).astype(jnp.float32))
    return out[:M] if Mp != M else out


# ----------------------------------------------------------------------------
# Depthwise causal conv1d + SiLU (grid over batch x channel lanes, no padding
# copy, no layout transpose round-trip)
# ----------------------------------------------------------------------------
def _dwconv_kernel(x_ref, w_ref, b_ref, o_ref, *, K):
    L, C = o_ref.shape
    x = x_ref[...].astype(jnp.float32)
    w = w_ref[...]
    b = b_ref[...]
    Lb = L - (K - 1)
    # Bulk rows t >= K-1 via shifted static slices (no zero-padded input copy).
    acc = x[K - 1:, :] * w[K - 1:K, :] + b
    for k in range(K - 1):
        acc = acc + x[k:k + Lb, :] * w[k:k + 1, :]
    # Head rows t < K-1 read from the implicit causal zero prefix.
    head = []
    for t in range(K - 1):
        r = b
        for j in range(t + 1):
            r = r + x[j:j + 1, :] * w[K - 1 - t + j:K - t + j, :]
        head.append(r)
    y = jnp.concatenate(head + [acc], axis=0) if head else acc
    o_ref[...] = (y * jax.nn.sigmoid(y)).astype(o_ref.dtype)       # fused SiLU


def pallas_dwconv_silu(x, w, b_row, out_dtype=jnp.bfloat16):
    # x: (B, L, Di) causal depthwise conv over the sequence axis.
    B, L, Di = x.shape
    K = w.shape[0]
    assert L >= K, "sequence shorter than conv kernel"
    TC = _lane_tile(Di, 256)
    return pl.pallas_call(
        functools.partial(_dwconv_kernel, K=K),
        out_shape=jax.ShapeDtypeStruct((B, L, Di), out_dtype),
        grid=(B, Di // TC),
        in_specs=[pl.BlockSpec((None, L, TC), lambda bi, j: (bi, 0, j)),
                  pl.BlockSpec((K, TC), lambda bi, j: (0, j)),
                  pl.BlockSpec((1, TC), lambda bi, j: (0, j))],
        out_specs=pl.BlockSpec((None, L, TC), lambda bi, j: (bi, 0, j)),
        compiler_params=pltpu.CompilerParams(
            dimension_semantics=("parallel", "parallel"),
            vmem_limit_bytes=32 * 1024 * 1024),
    )(x, w, b_row)


# ----------------------------------------------------------------------------
# Selective scan (Mamba SSM)
#   grid = (batch, d_inner tiles, seq tiles["arbitrary"]); the SSM state is a
#   small (Ds, Dt) VMEM scratch carried across the sequence axis.  Everything
#   (softplus(dt), exp(dt*A), dt*u*B, C-reduce, D-skip, SiLU(z) gate) is
#   computed per 8-row sub-chunk inside the block -> no O(L*Ds*Di) scratch.
# ----------------------------------------------------------------------------
def _ssm_kernel(u_ref, dtpre_ref, bc_ref, z_ref, At_ref, D_ref, dtb_ref,
                o_ref, h_ref, *, csz, d_state):
    TL, Dt = o_ref.shape
    Ds = d_state

    @pl.when(pl.program_id(2) == 0)
    def _():                                           # new (b, j) sequence
        h_ref[...] = jnp.zeros_like(h_ref)

    At = At_ref[...]                                   # (Ds, Dt)
    Dv = D_ref[...]                                    # (1, Dt)
    dtb = dtb_ref[...]                                 # (1, Dt)
    u = u_ref[...].astype(jnp.float32)                 # (TL, Dt)
    z = z_ref[...].astype(jnp.float32)
    dtpre = dtpre_ref[...].astype(jnp.float32)
    bc = bc_ref[...].astype(jnp.float32)               # (TL, 2*Ds)
    Bm = bc[:, :Ds]
    Cm = bc[:, Ds:]

    h = h_ref[...]                                     # (Ds, Dt) f32 state
    ys = []
    for s0 in range(0, TL, csz):                       # static sub-chunks
        u_c = u[s0:s0 + csz]
        dtp = dtpre[s0:s0 + csz] + dtb
        dt_c = jnp.maximum(dtp, 0.0) + jnp.log(1.0 + jnp.exp(-jnp.abs(dtp)))
        dA = jnp.exp(dt_c[:, None, :] * At[None, :, :])            # (csz,Ds,Dt)
        dBu = (dt_c * u_c)[:, None, :] * Bm[s0:s0 + csz][:, :, None]
        hs = []
        for s in range(csz):                           # pure-VALU recurrence
            h = dA[s] * h + dBu[s]
            hs.append(h)
        hstk = jnp.stack(hs, axis=0)                   # (csz, Ds, Dt)
        y_c = jnp.sum(hstk * Cm[s0:s0 + csz][:, :, None], axis=1)  # one reduce
        z_c = z[s0:s0 + csz]
        ys.append((y_c + Dv * u_c) * (z_c * jax.nn.sigmoid(z_c)))  # fused gate
    h_ref[...] = h
    o_ref[...] = jnp.concatenate(ys, axis=0).astype(o_ref.dtype)


def pallas_selective_scan(u, dt_pre, bc, z, A_t, D_row, dt_bias_row,
                          out_dtype=jnp.bfloat16):
    B, L, Di = u.shape
    Ds = A_t.shape[0]
    Dt = _lane_tile(Di, 128)
    TL = _seq_tile(L)
    csz = 8 if TL % 8 == 0 else (4 if TL % 4 == 0 else (2 if TL % 2 == 0 else 1))
    return pl.pallas_call(
        functools.partial(_ssm_kernel, csz=csz, d_state=Ds),
        out_shape=jax.ShapeDtypeStruct((B, L, Di), out_dtype),
        grid=(B, Di // Dt, L // TL),
        in_specs=[pl.BlockSpec((None, TL, Dt), lambda b, j, l: (b, l, j)),   # u
                  pl.BlockSpec((None, TL, Dt), lambda b, j, l: (b, l, j)),   # dt_pre
                  pl.BlockSpec((None, TL, 2 * Ds), lambda b, j, l: (b, l, 0)),
                  pl.BlockSpec((None, TL, Dt), lambda b, j, l: (b, l, j)),   # z
                  pl.BlockSpec((Ds, Dt), lambda b, j, l: (0, j)),            # A^T
                  pl.BlockSpec((1, Dt), lambda b, j, l: (0, j)),             # D
                  pl.BlockSpec((1, Dt), lambda b, j, l: (0, j))],            # dt bias
        out_specs=pl.BlockSpec((None, TL, Dt), lambda b, j, l: (b, l, j)),
        scratch_shapes=[pltpu.VMEM((Ds, Dt), jnp.float32)],
        compiler_params=pltpu.CompilerParams(
            dimension_semantics=("parallel", "parallel", "arbitrary"),
            vmem_limit_bytes=32 * 1024 * 1024),
    )(u, dt_pre, bc, z, A_t, D_row, dt_bias_row)


# ----------------------------------------------------------------------------
# Mamba block / MixerLayers / PointSIS_Encoder composition (plain-JAX glue)
# ----------------------------------------------------------------------------
def mamba_forward(x, ln_g, ln_b, p, cfg):
    # Block: h = LN(x); Mamba(h).  The LN is fused into in_proj's kernel.
    B, L, d = x.shape
    Di, Ds = cfg["d_inner"], cfg["d_state"]
    xz = pallas_linear(x.reshape(B * L, d), p["in_proj_w"],
                       ln_gamma=ln_g, ln_beta=ln_b,
                       out_dtype=jnp.bfloat16).reshape(B, L, 2 * Di)
    xc, z = jnp.split(xz, 2, axis=-1)
    xc = pallas_dwconv_silu(xc, p["conv_w"], p["conv_b"])          # (B, L, Di) bf16
    # x_proj and dt_proj pre-composed into one lane-dense matmul:
    #   columns [0:Di) = dt_pre, [Di:Di+Ds) = B, [Di+Ds:) = C.
    xdbl = pallas_linear(xc.reshape(B * L, Di), p["xdt_w"],
                         out_dtype=jnp.float32).reshape(B, L, Di + 2 * Ds)
    dt_pre = xdbl[..., :Di]
    bc = xdbl[..., Di:]
    y = pallas_selective_scan(xc, dt_pre, bc, z, p["A_t"], p["D"], p["dt_bias"],
                              out_dtype=jnp.bfloat16)              # (B, L, Di)
    out = pallas_linear(y.reshape(B * L, Di), p["out_proj_w"],
                        out_dtype=jnp.float32).reshape(B, L, d)
    return out


def mixer_layers_fwd(p, x, cfg):
    # MixerLayers: residual-style Mamba Block stack + final LayerNorm.
    B, L, d = x.shape
    hidden, residual = x, None
    for blk in p["blocks"]:
        residual = hidden if residual is None else hidden + residual
        hidden = mamba_forward(residual, blk["ln_g"], blk["ln_b"], blk["mamba"], cfg)
    hidden = hidden + residual if residual is not None else hidden
    hidden = pallas_layernorm(hidden.reshape(B * L, d),
                              p["norm_f_g"], p["norm_f_b"]).reshape(B, L, d)
    return hidden


def encoder_fwd(p, feats, s_order, s_inverse, batch, cfg):
    # PointSIS_Encoder.forward
    # TODO(synk): point-cloud serialization (space-filling-curve order
    # generation) has no Pallas equivalent; serialized orders are inputs.
    b_s = int(batch[-1]) + 1
    g = cfg["num_group"]
    d = feats[0].shape[-1]
    o_s = s_order.shape[0]
    level_feat = feats[::-1]                                       # s_pc.feat[::-1]
    n_lvl = len(level_feat)
    for o in range(o_s):
        # torch_scatter.scatter with a permutation index == gather with the
        # inverse permutation (avoids TPU's serialized scatter + zero-init).
        inv = s_inverse[o]
        stacked = [jnp.take(f, inv, axis=0).reshape(b_s, g, d) for f in level_feat]
        x = jnp.concatenate(stacked, axis=1)                       # (b, n_lvl*g, d)
        x = mixer_layers_fwd(p["mixers"][o], x, cfg)
        chunks = jnp.split(x, n_lvl, axis=1)
        order = s_order[o]
        level_feat = [jnp.take(c.reshape(b_s * g, d), order, axis=0) for c in chunks]
    return [f.reshape(b_s, g, d) for f in level_feat]


# ----------------------------------------------------------------------------
# Deterministic parameter init (PyTorch-shaped) + one-time preparation
# (bf16 weight casts, x_proj/dt_proj pre-composition, A/-exp hoist)
# ----------------------------------------------------------------------------
def init_linear(key, din, dout, bias=True):
    kw, kb = jax.random.split(key)
    p = {"w": jax.random.normal(kw, (din, dout), jnp.float32) * 0.05}
    p["b"] = (jax.random.normal(kb, (dout,), jnp.float32) * 0.05) if bias else None
    return p


def init_ln(d):
    return jnp.ones((d,), jnp.float32), jnp.zeros((d,), jnp.float32)


def init_mamba(key, cfg):
    d, Di, Ds, K, R = (cfg["d_model"], cfg["d_inner"], cfg["d_state"],
                       cfg["d_conv"], cfg["dt_rank"])
    ks = jax.random.split(key, 5)
    return {
        "in_proj": init_linear(ks[0], d, 2 * Di, bias=False),
        "conv_w": jax.random.normal(ks[1], (K, Di), jnp.float32) * 0.2,
        "conv_b": jnp.zeros((Di,), jnp.float32),
        "x_proj": init_linear(ks[2], Di, R + 2 * Ds, bias=False),
        "dt_proj": init_linear(ks[3], R, Di, bias=True),
        "A_log": jnp.log(jnp.broadcast_to(
            jnp.arange(1, Ds + 1, dtype=jnp.float32), (Di, Ds))),
        "D": jnp.ones((Di,), jnp.float32),
        "out_proj": init_linear(ks[4], Di, d, bias=False),
    }


def init_mixer_layers(key, depth, cfg):
    d = cfg["d_model"]
    ks = jax.random.split(key, depth)
    blocks = []
    for i in range(depth):
        g_, b_ = init_ln(d)
        blocks.append({"ln_g": g_, "ln_b": b_, "mamba": init_mamba(ks[i], cfg)})
    ng, nb = init_ln(d)
    return {"blocks": blocks, "norm_f_g": ng, "norm_f_b": nb}


def init_encoder(key, cfg):
    return {"mixers": [init_mixer_layers(k, cfg["enc_layer_depth"], cfg)
                       for k in jax.random.split(key, cfg["o_s"])]}


def prepare_mamba(p, cfg):
    Di, R = cfg["d_inner"], cfg["dt_rank"]
    Wx = p["x_proj"]["w"]                                # (Di, R+2*Ds)
    Wdt = p["dt_proj"]["w"]                              # (R, Di)
    w_fused = Wx[:, :R] @ Wdt                            # (Di, Di) — dt pre-composed
    xdt_w = jnp.concatenate([w_fused, Wx[:, R:]], axis=1)  # (Di, Di+2*Ds) lane-dense
    return {
        "in_proj_w": p["in_proj"]["w"].astype(jnp.bfloat16),
        "conv_w": p["conv_w"].astype(jnp.float32),
        "conv_b": p["conv_b"].reshape(1, Di).astype(jnp.float32),
        "xdt_w": xdt_w.astype(jnp.bfloat16),
        "dt_bias": p["dt_proj"]["b"].reshape(1, Di).astype(jnp.float32),
        "A_t": (-jnp.exp(p["A_log"])).T.astype(jnp.float32),      # (Ds, Di)
        "D": p["D"].reshape(1, Di).astype(jnp.float32),
        "out_proj_w": p["out_proj"]["w"].astype(jnp.bfloat16),
    }


def prepare_mixer(p, cfg):
    return {"blocks": [{"ln_g": b["ln_g"], "ln_b": b["ln_b"],
                        "mamba": prepare_mamba(b["mamba"], cfg)}
                       for b in p["blocks"]],
            "norm_f_g": p["norm_f_g"], "norm_f_b": p["norm_f_b"]}


def prepare_encoder(p, cfg):
    return {"mixers": [prepare_mixer(m, cfg) for m in p["mixers"]]}


# ----------------------------------------------------------------------------
if __name__ == "__main__":
    key = jax.random.PRNGKey(0)
    cfg = dict(b_s=2, num_group=16, o_s=2, num_feature_levels=2,
               d_model=128, enc_layer_depth=2,
               d_state=16, d_conv=4, expand=2)
    cfg["d_inner"] = cfg["expand"] * cfg["d_model"]
    cfg["dt_rank"] = max(1, cfg["d_model"] // 16)

    b_s, g, d = cfg["b_s"], cfg["num_group"], cfg["d_model"]
    N = b_s * g

    k_feat, k_perm, k_par = jax.random.split(key, 3)
    feat_keys = jax.random.split(k_feat, cfg["num_feature_levels"])
    feats = [jax.random.normal(k, (N, d), jnp.float32) for k in feat_keys]
    batch = jnp.repeat(jnp.arange(b_s, dtype=jnp.int32), g)

    orders, invs = [], []
    kk = k_perm
    for _ in range(cfg["o_s"]):
        kk, sk = jax.random.split(kk)
        perm = jax.random.permutation(sk, N)
        orders.append(perm)
        invs.append(jnp.argsort(perm))
    s_order = jnp.stack(orders)
    s_inverse = jnp.stack(invs)

    raw_params = init_encoder(k_par, cfg)
    params = prepare_encoder(raw_params, cfg)           # one-time weight prep
    level_out = encoder_fwd(params, feats, s_order, s_inverse, batch, cfg)
    jax.block_until_ready(level_out)

    assert len(level_out) == cfg["num_feature_levels"]
    for f in level_out:
        assert f.shape == (b_s, g, d)
        assert bool(jnp.all(jnp.isfinite(f)))
    print("KERNEL_OK")
</pallas_src>

<mosaic_0001>
module attributes {stable_mosaic.version = 11 : i64} {
  func.func @_ln_linear_kernel(%arg0: i32, %arg1: memref<64x128xf32, #tpu.memory_space<vmem>>, %arg2: memref<1x128xf32, #tpu.memory_space<vmem>>, %arg3: memref<1x128xf32, #tpu.memory_space<vmem>>, %arg4: memref<128x512xbf16, #tpu.memory_space<vmem>>, %arg5: memref<1x512xf32, #tpu.memory_space<vmem>>, %arg6: memref<64x512xbf16, #tpu.memory_space<vmem>>) attributes {dimension_semantics = [#tpu.dimension_semantics<parallel>], iteration_bounds = array<i64: 1>, scalar_prefetch = 0 : i64, scratch_operands = 0 : i64, tpu.core_type = #tpu.core_type<tc>, window_params = [{transform_indices = @transform_0, window_bounds = array<i64: 64, 128>}, {pipeline_mode = #tpu.pipeline_mode<synchronous>, transform_indices = @transform_1, window_bounds = array<i64: 1, 128>}, {pipeline_mode = #tpu.pipeline_mode<synchronous>, transform_indices = @transform_2, window_bounds = array<i64: 1, 128>}, {pipeline_mode = #tpu.pipeline_mode<synchronous>, transform_indices = @transform_3, window_bounds = array<i64: 128, 512>}, {pipeline_mode = #tpu.pipeline_mode<synchronous>, transform_indices = @transform_4, window_bounds = array<i64: 1, 512>}, {transform_indices = @transform_5, window_bounds = array<i64: 64, 512>}]} {
    %c0 = arith.constant 0 : index
    %c0_0 = arith.constant 0 : index
    %0 = vector.load %arg1[%c0, %c0_0] : memref<64x128xf32, #tpu.memory_space<vmem>>, vector<64x128xf32>
    %cst = arith.constant dense<0.000000e+00> : vector<64xf32>
    %1 = vector.multi_reduction <add>, %0, %cst [1] : vector<64x128xf32> to vector<64xf32>
    %2 = vector.shape_cast %1 : vector<64xf32> to vector<64x1xf32>
    %cst_1 = arith.constant 1.280000e+02 : f32
    %3 = vector.broadcast %cst_1 : f32 to vector<64x1xf32>
    %4 = arith.divf %2, %3 : vector<64x1xf32>
    %5 = vector.broadcast %4 : vector<64x1xf32> to vector<64x128xf32>
    %6 = arith.subf %0, %5 : vector<64x128xf32>
    %7 = arith.mulf %6, %6 : vector<64x128xf32>
    %cst_2 = arith.constant dense<0.000000e+00> : vector<64xf32>
    %8 = vector.multi_reduction <add>, %7, %cst_2 [1] : vector<64x128xf32> to vector<64xf32>
    %9 = vector.shape_cast %8 : vector<64xf32> to vector<64x1xf32>
    %cst_3 = arith.constant 1.280000e+02 : f32
    %10 = vector.broadcast %cst_3 : f32 to vector<64x1xf32>
    %11 = arith.divf %9, %10 : vector<64x1xf32>
    %12 = vector.broadcast %4 : vector<64x1xf32> to vector<64x128xf32>
    %13 = arith.subf %0, %12 : vector<64x128xf32>
    %cst_4 = arith.constant 9.99999974E-6 : f32
    %14 = vector.broadcast %cst_4 : f32 to vector<64x1xf32>
    %15 = arith.addf %11, %14 : vector<64x1xf32>
    %16 = math.rsqrt %15 : vector<64x1xf32>
    %17 = vector.broadcast %16 : vector<64x1xf32> to vector<64x128xf32>
    %18 = arith.mulf %13, %17 : vector<64x128xf32>
    %c0_5 = arith.constant 0 : index
    %c0_6 = arith.constant 0 : index
    %19 = vector.load %arg2[%c0_5, %c0_6] : memref<1x128xf32, #tpu.memory_space<vmem>>, vector<1x128xf32>
    %20 = vector.broadcast %19 : vector<1x128xf32> to vector<64x128xf32>
    %21 = arith.mulf %18, %20 : vector<64x128xf32>
    %c0_7 = arith.constant 0 : index
    %c0_8 = arith.constant 0 : index
    %22 = vector.load %arg3[%c0_7, %c0_8] : memref<1x128xf32, #tpu.memory_space<vmem>>, vector<1x128xf32>
    %23 = vector.broadcast %22 : vector<1x128xf32> to vector<64x128xf32>
    %24 = arith.addf %21, %23 : vector<64x128xf32>
    %25 = arith.truncf %24 : vector<64x128xf32> to vector<64x128xbf16>
    %c0_9 = arith.constant 0 : index
    %c0_10 = arith.constant 0 : index
    %26 = vector.load %arg4[%c0_9, %c0_10] : memref<128x512xbf16, #tpu.memory_space<vmem>>, vector<128x512xbf16>
    %cst_11 = arith.constant dense<0.000000e+00> : vector<64x512xf32>
    %27 = tpu.matmul %25, %26, %cst_11 {dimension_numbers = #tpu.dot_dimension_numbers<[1], [0], [0], [1], [0, 0, 1, 1], [], []>} : vector<64x128xbf16>, vector<128x512xbf16>, vector<64x512xf32> -> vector<64x512xf32>
    %c0_12 = arith.constant 0 : index
    %c0_13 = arith.constant 0 : index
    %28 = vector.load %arg5[%c0_12, %c0_13] : memref<1x512xf32, #tpu.memory_space<vmem>>, vector<1x512xf32>
    %29 = vector.broadcast %28 : vector<1x512xf32> to vector<64x512xf32>
    %30 = arith.addf %27, %29 : vector<64x512xf32>
    %31 = arith.truncf %30 : vector<64x512xf32> to vector<64x512xbf16>
    %c0_14 = arith.constant 0 : index
    %c0_15 = arith.constant 0 : index
    %32 = vector.load %arg6[%c0_14, %c0_15] : memref<64x512xbf16, #tpu.memory_space<vmem>>, vector<64x512xbf16>
    tpu.vector_store %arg6[%c0_14, %c0_15], %31 {strides = array<i32>} : memref<64x512xbf16, #tpu.memory_space<vmem>>, vector<64x512xbf16>,
    return
  }
  func.func @transform_0(%arg0: i32) -> (i32, i32) {
    %c0_i32 = arith.constant 0 : i32
    %c0_i32_0 = arith.constant 0 : i32
    return %arg0, %c0_i32 : i32, i32
  }
  func.func @transform_1(%arg0: i32) -> (i32, i32) {
    %c0_i32 = arith.constant 0 : i32
    %c0_i32_0 = arith.constant 0 : i32
    %c0_i32_1 = arith.constant 0 : i32
    return %c0_i32, %c0_i32_0 : i32, i32
  }
  func.func @transform_2(%arg0: i32) -> (i32, i32) {
    %c0_i32 = arith.constant 0 : i32
    %c0_i32_0 = arith.constant 0 : i32
    %c0_i32_1 = arith.constant 0 : i32
    return %c0_i32, %c0_i32_0 : i32, i32
  }
  func.func @transform_3(%arg0: i32) -> (i32, i32) {
    %c0_i32 = arith.constant 0 : i32
    %c0_i32_0 = arith.constant 0 : i32
    %c0_i32_1 = arith.constant 0 : i32
    return %c0_i32, %c0_i32_0 : i32, i32
  }
  func.func @transform_4(%arg0: i32) -> (i32, i32) {
    %c0_i32 = arith.constant 0 : i32
    %c0_i32_0 = arith.constant 0 : i32
    %c0_i32_1 = arith.constant 0 : i32
    return %c0_i32, %c0_i32_0 : i32, i32
  }
  func.func @transform_5(%arg0: i32) -> (i32, i32) {
    %c0_i32 = arith.constant 0 : i32
    %c0_i32_0 = arith.constant 0 : i32
    return %arg0, %c0_i32 : i32, i32
  }
}

</mosaic_0001>

<bundles_post_ra>
// kernel: tpu_custom_call.1
= control target key start
LH: loop header
LB: loop body
LE: loop exit
PB: predicated region body
PF: predicated region fallthrough
CT: control target
= control target key end

     0   :  { %10 = vsyncpa [#allocation3], 0  ;;  %s1175_s0 = inlined_call_operand.hbm [shape: f32[64,128], index: 0, kind: input, shape index: {}]   ;;  %s1176_s1 = inlined_call_operand.hbm [shape: f32[1,128], index: 1, kind: input, shape index: {}]   ;;  %s1177_s2 = inlined_call_operand.vmem [shape: f32[1,128], index: 2, kind: input, shape index: {}]   ;;  %s1178_s3 = inlined_call_operand.hbm [shape: bf16[128,512], index: 3, kind: input, shape index: {}]   ;;  %s1179_s4 = inlined_call_operand.hbm [shape: f32[1,512], index: 4, kind: input, shape index: {}]   ;;  %s1180_s5 = inlined_call_operand.hbm [shape: bf16[64,512], index: 5, kind: output, shape index: {}]  }
   0x1   :  { %11 = vsyncpa [#allocation6], 0 }
   0x2   :  { %12 = vsyncpa [#allocation9], 0  ;;  %s32_s20 = sshll.u32 %s1176_s1, 4  ;;  %s33_s20 = int_to_ptr.hbm [resolvable:$true] %s32_s20 }
   0x3   :  { %13 = vsyncpa [#allocation4], 0  ;;  %s972_s21 = smov [#allocation5]   ;;  %s18_s25 = sshll.u32 %s1175_s0, 4  ;;  %s19_s25 = int_to_ptr.hbm [resolvable:$true] %s18_s25 }
   0x4   :  { %s34_s22 = sshll.u32 %s972_s21, 4  ;;  %s973_s26 = smov [#allocation2]   ;;  %s35_s22 = int_to_ptr.vmem [resolvable:$true] %s34_s22 }
   0x5   :  { %37 = dma.hbm_to_vmem [thread:$0]  %s33_s20, 16, %s35_s22, [#allocation6]  }
   0x6   :  { %s20_s27 = sshll.u32 %s973_s26, 4  ;;  %s974_s28 = smov 128   ;;  %s21_s27 = int_to_ptr.vmem [resolvable:$true] %s20_s27 }
   0x7   :  { %s975_s29 = smov 8   ;;  %s44_s1 = sshll.u32 %s1178_s3, 4  ;;  %s45_s1 = int_to_ptr.hbm [resolvable:$true] %s44_s1 }
   0x8   :  { %26 = dma.hbm_to_vmem [thread:$0]  %s19_s25, 1024, %s21_s27, [#allocation3], %s974_s28, %s974_s28, %s975_s29  }
   0x9   :  { %s976_s7 = smov [#allocation7]   ;;  %s58_s0 = sshll.u32 %s1179_s4, 4  ;;  %s59_s0 = int_to_ptr.hbm [resolvable:$true] %s58_s0 }
   0xa   :  { %s46_s8 = sshll.u32 %s976_s7, 4  ;;  %s977_s11 = smov 256   ;;  %s47_s8 = int_to_ptr.vmem [resolvable:$true] %s46_s8 }
   0xb   :  { %s978_s12 = smov 16   ;;  %s979_s13 = smov [#allocation8]  }
   0xc   :  { %52 = dma.hbm_to_vmem [thread:$0]  %s45_s1, 4096, %s47_s8, [#allocation6], %s977_s11, %s977_s11, %s978_s12  }
   0xd   :  { %s60_s14 = sshll.u32 %s979_s13, 4  ;;  %s61_s14 = int_to_ptr.vmem [resolvable:$true] %s60_s14 }
   0xe   :  { %63 = dma.hbm_to_vmem [thread:$0]  %s59_s0, 64, %s61_s14, [#allocation9]  }
   0xf   :  { %964 = dma.done.wait [#allocation3], 1024  }
  0x10   :  { %965 = vsyncadd [#allocation3], 4294966272 }
  0x11   :  { %966 = dma.done.wait [#allocation6], 4112  }
  0x12   :  { %967 = vsyncadd [#allocation6], 4294963184 }
  0x13   :  { %968 = dma.done.wait [#allocation9], 64  }
  0x14   :  { %969 = vsyncadd [#allocation9], 4294967232  ;;  %v84_v0 = vld [vmem:[#allocation2 + $0x20] sm:$0xff]  ;;  %v82_v1 = vld [vmem:[#allocation2 + $0x10] sm:$0xff]  ;;  %v980_v7 = vmov 128.0   ;;  %s639_s18 = sshll.u32 %s1180_s5, 4  ;;  %s640_s18 = int_to_ptr.hbm [resolvable:$true] %s639_s18 }
  0x15   :  { %v80_v2 = vld [vmem:[#allocation2] sm:$0xff]  ;;  %96 = vadd.xlane.f32.xlu2 %v84_v0  ;;  %92 = vadd.xlane.f32.xlu1 %v82_v1  ;;  %v85_v3 = vld [vmem:[#allocation2 + $0x28] sm:$0xff]  ;;  %v83_v4 = vld [vmem:[#allocation2 + $0x18] sm:$0xff]  ;;  %826 = vrcp.f32 %v980_v7 }
  0x16   :  { %88 = vadd.xlane.f32.xlu0 %v80_v2  ;;  %v81_v5 = vld [vmem:[#allocation2 + $0x8] sm:$0xff]  ;;  %v86_v6 = vld [vmem:[#allocation2 + $0x30] sm:$0xff]  ;;  %v1044_v30 = vld [vmem:[#allocation2 + $0x38] sm:$0xff] }
  0x17   :  { %v768_v43 = vld [vmem:[#allocation7 + $0xe0] sm:$0xf]  ;;  %v812_v44 = vld [vmem:[#allocation7 + $0xec] sm:$0xf0]  ;;  %v810_v45 = vld [vmem:[#allocation7 + $0xe4] sm:$0xf] }
  0x18   :  { %v769_v46 = vor.u32 %v812_v44, %v768_v43  ;;  %v770_v47 = vld [vmem:[#allocation7 + $0xf0] sm:$0xf0]  ;;  %v776_v48 = vld [vmem:[#allocation7 + $0xe8] sm:$0xf]  ;;  %v813_v49 = vld [vmem:[#allocation7 + $0xf4] sm:$0xf0] }
  0x19   :  { %v773_v50 = vor.u32 %v810_v45, %v770_v47  ;;  %v777_v51 = vor.u32 %v813_v49, %v776_v48  ;;  %v811_v52 = vld [vmem:[#allocation7 + $0xec] sm:$0xf]  ;;  %v778_v53 = vld [vmem:[#allocation7 + $0xf8] sm:$0xf0]  ;;  %v752_v55 = vld [vmem:[#allocation7 + $0xc0] sm:$0xf] }
  0x1a   :  { %485 = vmatpush.bf16.msra.mxu0 %v769_v46  ;;  %v781_v54 = vor.u32 %v811_v52, %v778_v53  ;;  %v808_v56 = vld [vmem:[#allocation7 + $0xcc] sm:$0xf0]  ;;  %v806_v57 = vld [vmem:[#allocation7 + $0xc4] sm:$0xf]  ;;  %v754_v59 = vld [vmem:[#allocation7 + $0xd0] sm:$0xf0] }
  0x1b   :  { %v827_v8 = vpop.eup %826  ;;  %514 = vmatpush.bf16.msra.mxu1 %v773_v50  ;;  %543 = vmatpush.bf16.msra.mxu2 %v777_v51  ;;  %v753_v58 = vor.u32 %v808_v56, %v752_v55  ;;  %v760_v60 = vld [vmem:[#allocation7 + $0xc8] sm:$0xf]  ;;  %v809_v61 = vld [vmem:[#allocation7 + $0xd4] sm:$0xf0]  ;;  %v757_v62 = vor.u32 %v806_v57, %v754_v59  ;;  %v738_v7 = vld [vmem:[#allocation7 + $0xb0] sm:$0xf0] }
  0x1c   :  { %v105_v9 = vmul.f32 128.0, %v827_v8  ;;  %vm109_vm0 = vweird.f32 %v827_v8  ;;  %572 = vmatpush.bf16.msra.mxu3 %v781_v54  ;;  %v761_v63 = vor.u32 %v809_v61, %v760_v60  ;;  %v795_v45 = vld [vmem:[#allocation7 + $0x6c] sm:$0xf]  ;;  %v714_v46 = vld [vmem:[#allocation7 + $0x78] sm:$0xf0] }
  0x1d   :  { %98 = vadd.xlane.f32.xlu2 %v85_v3  ;;  %94 = vadd.xlane.f32.xlu1 %v83_v4  ;;  %v717_v47 = vor.u32 %v795_v45, %v714_v46  ;;  %v688_v48 = vld [vmem:[#allocation7 + $0x40] sm:$0xf]  ;;  %v792_v49 = vld [vmem:[#allocation7 + $0x4c] sm:$0xf0]  ;;  %v790_v50 = vld [vmem:[#allocation7 + $0x44] sm:$0xf] }
  0x1e   :  { %90 = vadd.xlane.f32.xlu0 %v81_v5  ;;  %v106_v10 = vsub.f32 1.0, %v105_v9  ;;  %486 = vmatpush.bf16.msra.mxu0 %v753_v58  ;;  %v805_v9 = vld [vmem:[#allocation7 + $0xb4] sm:$0xf0]  ;;  %v689_v51 = vor.u32 %v792_v49, %v688_v48  ;;  %v690_v52 = vld [vmem:[#allocation7 + $0x50] sm:$0xf0] }
  0x1f   :  { %515 = vmatpush.bf16.msra.mxu1 %v757_v62  ;;  %544 = vmatpush.bf16.msra.mxu2 %v761_v63  ;;  %v696_v53 = vld [vmem:[#allocation7 + $0x48] sm:$0xf]  ;;  %v793_v54 = vld [vmem:[#allocation7 + $0x54] sm:$0xf0]  ;;  %v693_v55 = vor.u32 %v790_v50, %v690_v52  ;;  %v791_v57 = vld [vmem:[#allocation7 + $0x4c] sm:$0xf] }
  0x20   :  { %v107_v11 = vmul.f32 %v827_v8, %v106_v10  ;;  %v697_v56 = vor.u32 %v793_v54, %v696_v53  ;;  %v698_v58 = vld [vmem:[#allocation7 + $0x58] sm:$0xf0]  ;;  %v672_v60 = vld [vmem:[#allocation7 + $0x20] sm:$0xf]  ;;  %v788_v61 = vld [vmem:[#allocation7 + $0x2c] sm:$0xf0] }
  0x21   :  { %v701_v59 = vor.u32 %v791_v57, %v698_v58  ;;  %v786_v62 = vld [vmem:[#allocation7 + $0x24] sm:$0xf]  ;;  %v673_v63 = vor.u32 %v788_v61, %v672_v60 }
  0x22   :  { %v108_v12 = vadd.f32 %v827_v8, %v107_v11 }
  0x24   :  { %v1027_v13 = vsel %vm109_vm0, %v827_v8, %v108_v12  ;;  %v744_v8 = vld [vmem:[#allocation7 + $0xa8] sm:$0xf]  ;;  %v803_v12 = vld [vmem:[#allocation7 + $0xac] sm:$0xf] }
  0x25   :  { %100 = vadd.xlane.f32.xlu2 %v86_v6  ;;  %v745_v11 = vor.u32 %v805_v9, %v744_v8 }
  0x27   :  { %545 = vmatpush.bf16.msra.mxu2 %v745_v11  ;;  %v784_v11 = vld [vmem:[#allocation7 + $0xc] sm:$0xf0] }
  0x88   :  { %v97_v14 = vpop.xlane.xlu2 %96  ;;  %v93_v15 = vpop.xlane.xlu1 %92 }
  0x89   :  { %v89_v16 = vpop.xlane.xlu0 %88  ;;  %v115_v26 = vmul.f32 %v1027_v13, %v97_v14  ;;  %v113_v27 = vmul.f32 %v1027_v13, %v93_v15  ;;  %v746_v14 = vld [vmem:[#allocation7 + $0xb8] sm:$0xf0] }
  0x8a   :  { %v111_v17 = vmul.f32 %v1027_v13, %v89_v16  ;;  %v749_v15 = vor.u32 %v803_v12, %v746_v14  ;;  %v720_v16 = vld [vmem:[#allocation7 + $0x80] sm:$0xf]  ;;  %v782_v12 = vld [vmem:[#allocation7 + $0x4] sm:$0xf] }
  0x8b   :  { %v1048_v32 = vsub.f32 %v84_v0, %v115_v26  ;;  %v1050_v33 = vsub.f32 %v82_v1, %v113_v27  ;;  %v807_v0 = vld [vmem:[#allocation7 + $0xcc] sm:$0xf]  ;;  %v762_v1 = vld [vmem:[#allocation7 + $0xd8] sm:$0xf0] }
  0x8c   :  { %v1030_v18 = vsub.f32 %v80_v2, %v111_v17  ;;  %v765_v2 = vor.u32 %v807_v0, %v762_v1  ;;  %v800_v17 = vld [vmem:[#allocation7 + $0x8c] sm:$0xf0]  ;;  %v799_v27 = vld [vmem:[#allocation7 + $0x8c] sm:$0xf]  ;;  %v674_v0 = vld [vmem:[#allocation7 + $0x30] sm:$0xf0] }
  0x8d   :  { %v131_v38 = vmul.f32 %v1048_v32, %v1048_v32  ;;  %v129_v39 = vmul.f32 %v1050_v33, %v1050_v33  ;;  %v680_v1 = vld [vmem:[#allocation7 + $0x28] sm:$0xf] }
  0x8e   :  { %v127_v19 = vmul.f32 %v1030_v18, %v1030_v18  ;;  %573 = vmatpush.bf16.msra.mxu3 %v765_v2  ;;  %v789_v2 = vld [vmem:[#allocation7 + $0x34] sm:$0xf0] }
  0x90   :  { %135 = vadd.xlane.f32.xlu0 %v127_v19  ;;  %v99_v20 = vpop.xlane.xlu2 %98  ;;  %v95_v21 = vpop.xlane.xlu1 %94  ;;  %v798_v19 = vld [vmem:[#allocation7 + $0x84] sm:$0xf] }
  0x91   :  { %v114_v22 = vmul.f32 %v1027_v13, %v95_v21  ;;  %v91_v23 = vpop.xlane.xlu0 %90  ;;  %v116_v37 = vmul.f32 %v1027_v13, %v99_v20  ;;  %v721_v20 = vor.u32 %v800_v17, %v720_v16  ;;  %v722_v21 = vld [vmem:[#allocation7 + $0x90] sm:$0xf0]  ;;  %v664_v17 = vld [vmem:[#allocation7 + $0x8] sm:$0xf] }
  0x92   :  { %v112_v24 = vmul.f32 %v1027_v13, %v91_v23  ;;  %574 = vmatpush.bf16.msra.mxu3 %v749_v15  ;;  %v801_v23 = vld [vmem:[#allocation7 + $0x94] sm:$0xf0]  ;;  %v658_v16 = vld [vmem:[#allocation7 + $0x10] sm:$0xf0] }
  0x93   :  { %v1036_v25 = vsub.f32 %v83_v4, %v114_v22  ;;  %v1063_v41 = vsub.f32 %v85_v3, %v116_v37  ;;  %v736_v3 = vld [vmem:[#allocation7 + $0xa0] sm:$0xf]  ;;  %v804_v4 = vld [vmem:[#allocation7 + $0xac] sm:$0xf0]  ;;  %v728_v22 = vld [vmem:[#allocation7 + $0x88] sm:$0xf] }
  0x94   :  { %v1040_v28 = vsub.f32 %v81_v5, %v112_v24  ;;  %v802_v5 = vld [vmem:[#allocation7 + $0xa4] sm:$0xf]  ;;  %v725_v24 = vor.u32 %v798_v19, %v722_v21  ;;  %v729_v26 = vor.u32 %v801_v23, %v728_v22  ;;  %v661_v19 = vor.u32 %v782_v12, %v658_v16  ;;  %v783_v21 = vld [vmem:[#allocation7 + $0xc] sm:$0xf]  ;;  %v666_v22 = vld [vmem:[#allocation7 + $0x18] sm:$0xf0] }
  0x95   :  { %v130_v29 = vmul.f32 %v1036_v25, %v1036_v25  ;;  %v132_v42 = vmul.f32 %v1063_v41, %v1063_v41  ;;  %v741_v10 = vor.u32 %v802_v5, %v738_v7  ;;  %v794_v37 = vld [vmem:[#allocation7 + $0x64] sm:$0xf]  ;;  %v681_v5 = vor.u32 %v789_v2, %v680_v1  ;;  %v682_v7 = vld [vmem:[#allocation7 + $0x38] sm:$0xf0] }
  0x96   :  { %v128_v31 = vmul.f32 %v1040_v28, %v1040_v28  ;;  %546 = vmatpush.bf16.msra.mxu2 %v729_v26  ;;  %v1098_v12 = vld [vmem:[%s1177_s2] ss:$0 sm:$0xff]  ;;  %s981_s2 = smov [#allocation10]  }
  0x97   :  { %141 = vadd.xlane.f32.xlu2 %v130_v29  ;;  %516 = vmatpush.bf16.msra.mxu1 %v741_v10  ;;  %v730_v29 = vld [vmem:[#allocation7 + $0x98] sm:$0xf0]  ;;  %v656_v10 = vld [vmem:[#allocation7] sm:$0xf]  ;;  %s637_s15 = sshll.u32 %s981_s2, 4  ;;  %s638_s15 = int_to_ptr.vmem [resolvable:$true] %s637_s15 }
  0x98   :  { %102 = vadd.xlane.f32.xlu0 %v1044_v30  ;;  %137 = vadd.xlane.f32.xlu1 %v128_v31  ;;  %v101_v34 = vpop.xlane.xlu2 %100  ;;  %v733_v31 = vor.u32 %v799_v27, %v730_v29  ;;  %v657_v15 = vor.u32 %v784_v11, %v656_v10 }
  0x99   :  { %v117_v35 = vmul.f32 %v1027_v13, %v101_v34  ;;  %v704_v34 = vld [vmem:[#allocation7 + $0x60] sm:$0xf] }
  0x9a   :  { %575 = vmatpush.bf16.msra.mxu3 %v733_v31 }
  0x9b   :  { %v1054_v36 = vsub.f32 %v86_v6, %v117_v35  ;;  %v737_v6 = vor.u32 %v804_v4, %v736_v3  ;;  %517 = vmatpush.bf16.msra.mxu1 %v725_v24  ;;  %v796_v35 = vld [vmem:[#allocation7 + $0x6c] sm:$0xf0]  ;;  %v677_v4 = vor.u32 %v786_v62, %v674_v0  ;;  %v669_v24 = vor.u32 %v783_v21, %v666_v22 }
  0x9d   :  { %v133_v40 = vmul.f32 %v1054_v36, %v1054_v36  ;;  %487 = vmatpush.bf16.msra.mxu0 %v737_v6  ;;  %v787_v6 = vld [vmem:[#allocation7 + $0x2c] sm:$0xf] }
  0x9e   :  { %576 = vmatpush.bf16.msra.mxu3 %v717_v47  ;;  %v685_v9 = vor.u32 %v787_v6, %v682_v7 }
  0x9f   :  { %147 = vadd.xlane.f32.xlu2 %v133_v40  ;;  %v712_v40 = vld [vmem:[#allocation7 + $0x68] sm:$0xf] }
  0xa0   :  { %143 = vadd.xlane.f32.xlu0 %v131_v38  ;;  %139 = vadd.xlane.f32.xlu1 %v129_v39  ;;  %v705_v38 = vor.u32 %v796_v35, %v704_v34  ;;  %v706_v39 = vld [vmem:[#allocation7 + $0x70] sm:$0xf0] }
  0xa1   :  { %488 = vmatpush.bf16.msra.mxu0 %v721_v20  ;;  %v709_v43 = vor.u32 %v794_v37, %v706_v39  ;;  %v785_v20 = vld [vmem:[#allocation7 + $0x14] sm:$0xf0] }
  0xa2   :  { %577 = vmatpush.bf16.msra.mxu3 %v701_v59  ;;  %v665_v23 = vor.u32 %v785_v20, %v664_v17 }
  0xa3   :  { %518 = vmatpush.bf16.msra.mxu1 %v709_v43 }
  0xa5   :  { %489 = vmatpush.bf16.msra.mxu0 %v705_v38 }
  0xa6   :  { %578 = vmatpush.bf16.msra.mxu3 %v685_v9 }
  0xa7   :  { %519 = vmatpush.bf16.msra.mxu1 %v693_v55 }
  0xa8   :  { %145 = vadd.xlane.f32.xlu1 %v132_v42  ;;  %v797_v42 = vld [vmem:[#allocation7 + $0x74] sm:$0xf0] }
  0xa9   :  { %v713_v44 = vor.u32 %v797_v42, %v712_v40  ;;  %490 = vmatpush.bf16.msra.mxu0 %v689_v51 }
  0xaa   :  { %579 = vmatpush.bf16.msra.mxu3 %v669_v24 }
  0xab   :  { %547 = vmatpush.bf16.msra.mxu2 %v713_v44  ;;  %520 = vmatpush.bf16.msra.mxu1 %v677_v4 }
  0xad   :  { %491 = vmatpush.bf16.msra.mxu0 %v673_v63 }
  0xaf   :  { %548 = vmatpush.bf16.msra.mxu2 %v697_v56  ;;  %521 = vmatpush.bf16.msra.mxu1 %v661_v19 }
  0xb1   :  { %492 = vmatpush.bf16.msra.mxu0 %v657_v15 }
  0xb3   :  { %549 = vmatpush.bf16.msra.mxu2 %v681_v5  ;;  %v1091_v5 = vld [vmem:[#allocation5] ss:$0 sm:$0xff] }
  0xb7   :  { %550 = vmatpush.bf16.msra.mxu2 %v665_v23 }
 0x103   :  { %v136_v3 = vpop.xlane.xlu0 %135 }
 0x104   :  { %v151_v8 = vmul.f32 %v136_v3, %v1027_v13 }
 0x106   :  { %v159_v14 = vadd.f32 1e-05, %v151_v8 }
 0x108   :  { %828 = vrsqrt.f32 %v159_v14  ;;  %vm173_vm2 = vweird.f32 %v159_v14 }
 0x10a   :  { %v142_v26 = vpop.xlane.xlu2 %141 }
 0x10b   :  { %v154_v27 = vmul.f32 %v142_v26, %v1027_v13  ;;  %v138_v29 = vpop.xlane.xlu1 %137  ;;  %v103_v31 = vpop.xlane.xlu0 %102 }
 0x10c   :  { %v152_v34 = vmul.f32 %v138_v29, %v1027_v13  ;;  %v118_v35 = vmul.f32 %v1027_v13, %v103_v31 }
 0x10d   :  { %v1071_v37 = vadd.f32 1e-05, %v154_v27 }
 0x10e   :  { %v829_v38 = vpop.eup %828  ;;  %v160_v39 = vadd.f32 1e-05, %v152_v34  ;;  %v1074_v40 = vsub.f32 %v1044_v30, %v118_v35 }
 0x10f   :  { %v168_v42 = vmul.f32 %v829_v38, %v159_v14  ;;  %830 = vrsqrt.f32 %v1071_v37  ;;  %vm174_vm1 = vweird.f32 %v829_v38  ;;  %vm203_vm9 = vweird.f32 %v1071_v37 }
 0x110   :  { %832 = vrsqrt.f32 %v160_v39  ;;  %v134_v43 = vmul.f32 %v1074_v40, %v1074_v40  ;;  %vm175_vm3 = vmor %vm173_vm2, %vm174_vm1  ;;  %vm183_vm4 = vweird.f32 %v160_v39 }
 0x111   :  { %v169_v44 = vmul.f32 %v829_v38, %v168_v42 }
 0x112   :  { %149 = vadd.xlane.f32.xlu0 %v134_v43 }
 0x113   :  { %v170_v45 = vmul.f32 0.5, %v169_v44  ;;  %v140_v46 = vpop.xlane.xlu1 %139  ;;  %v144_v48 = vpop.xlane.xlu0 %143 }
 0x114   :  { %v153_v47 = vmul.f32 %v140_v46, %v1027_v13  ;;  %v155_v53 = vmul.f32 %v144_v48, %v1027_v13 }
 0x115   :  { %v1080_v49 = vpop.eup %830  ;;  %v171_v50 = vsub.f32 1.5, %v170_v45 }
 0x116   :  { %v833_v51 = vpop.eup %832  ;;  %v161_v30 = vadd.f32 1e-05, %v153_v47  ;;  %v198_v55 = vmul.f32 %v1080_v49, %v1071_v37  ;;  %v1085_v58 = vadd.f32 1e-05, %v155_v53  ;;  %vm204_vm10 = vweird.f32 %v1080_v49 }
 0x117   :  { %v178_v52 = vmul.f32 %v833_v51, %v160_v39  ;;  %v172_v54 = vmul.f32 %v829_v38, %v171_v50  ;;  %vm184_vm5 = vweird.f32 %v833_v51  ;;  %vm205_vm12 = vmor %vm203_vm9, %vm204_vm10 }
 0x118   :  { %834 = vrsqrt.f32 %v161_v30  ;;  %v199_v61 = vmul.f32 %v1080_v49, %v198_v55  ;;  %vm185_vm6 = vmor %vm183_vm4, %vm184_vm5  ;;  %vm193_vm7 = vweird.f32 %v161_v30  ;;  %vm213_vm15 = vweird.f32 %v1085_v58 }
 0x119   :  { %v179_v56 = vmul.f32 %v833_v51, %v178_v52  ;;  %v176_v60 = vsel %vm175_vm3, %v829_v38, %v172_v54  ;;  %836 = vrsqrt.f32 %v1085_v58 }
 0x11a   :  { %v247_v2 = vmul.f32 %v176_v60, %v1030_v18  ;;  %v200_v6 = vmul.f32 0.5, %v199_v61 }
 0x11b   :  { %v180_v57 = vmul.f32 0.5, %v179_v56  ;;  %v146_v59 = vpop.xlane.xlu1 %145  ;;  %v148_v56 = vpop.xlane.xlu2 %147 }
 0x11c   :  { %v156_v62 = vmul.f32 %v146_v59, %v1027_v13  ;;  %v259_v11 = vmul.f32 %v1091_v5, %v247_v2  ;;  %v201_v18 = vsub.f32 1.5, %v200_v6 }
 0x11d   :  { %v181_v63 = vsub.f32 1.5, %v180_v57  ;;  %v157_v57 = vmul.f32 %v148_v56, %v1027_v13 }
 0x11e   :  { %v835_v0 = vpop.eup %834  ;;  %v164_v1 = vadd.f32 1e-05, %v156_v62  ;;  %v271_v20 = vadd.f32 %v1098_v12, %v259_v11  ;;  %v202_v21 = vmul.f32 %v1080_v49, %v201_v18 }
 0x11f   :  { %v182_v3 = vmul.f32 %v833_v51, %v181_v63  ;;  %v188_v4 = vmul.f32 %v835_v0, %v161_v30  ;;  %vm194_vm8 = vweird.f32 %v835_v0  ;;  %v837_v15 = vpop.eup %836 }
 0x120   :  { %838 = vrsqrt.f32 %v164_v1  ;;  %vm195_vm11 = vmor %vm193_vm7, %vm194_vm8  ;;  %v208_v22 = vmul.f32 %v837_v15, %v1085_v58  ;;  %v206_v29 = vsel %vm205_vm12, %v1080_v49, %v202_v21  ;;  %vm223_vm13 = vweird.f32 %v164_v1 }
 0x121   :  { %v186_v7 = vsel %vm185_vm6, %v833_v51, %v182_v3  ;;  %v189_v8 = vmul.f32 %v835_v0, %v188_v4  ;;  %v250_v37 = vmul.f32 %v206_v29, %v1036_v25  ;;  %vm214_vm0 = vweird.f32 %v837_v15 }
 0x122   :  { %v248_v9 = vmul.f32 %v186_v7, %v1040_v28  ;;  %v209_v31 = vmul.f32 %v837_v15, %v208_v22  ;;  %vm215_vm2 = vmor %vm213_vm15, %vm214_vm0  ;;  %v165_v58 = vadd.f32 1e-05, %v157_v57 }
 0x123   :  { %v190_v10 = vmul.f32 0.5, %v189_v8  ;;  %v262_v43 = vmul.f32 %v1091_v5, %v250_v37 }
 0x124   :  { %v260_v14 = vmul.f32 %v1091_v5, %v248_v9  ;;  %v210_v38 = vmul.f32 0.5, %v209_v31  ;;  %840 = vrsqrt.f32 %v165_v58  ;;  %vm233_vm3 = vweird.f32 %v165_v58 }
 0x125   :  { %v191_v16 = vsub.f32 1.5, %v190_v10 }
 0x126   :  { %v272_v28 = vadd.f32 %v1098_v12, %v260_v14  ;;  %v839_v17 = vpop.eup %838  ;;  %v211_v44 = vsub.f32 1.5, %v210_v38 }
 0x127   :  { %v192_v19 = vmul.f32 %v835_v0, %v191_v16  ;;  %v218_v23 = vmul.f32 %v839_v17, %v164_v1  ;;  %vm224_vm14 = vweird.f32 %v839_v17 }
 0x128   :  { %v279_v24 = vpack.c.bf16 %v272_v28, %v271_v20  ;;  %vm225_vm1 = vmor %vm223_vm13, %vm224_vm14  ;;  %v212_v47 = vmul.f32 %v837_v15, %v211_v44 }
 0x129   :  { %v196_v26 = vsel %vm195_vm11, %v835_v0, %v192_v19  ;;  %v219_v27 = vmul.f32 %v839_v17, %v218_v23 }
 0x12a   :  { %493 = vmatmul.bf16.vlgmr.msra.gmra.mxu0 %v279_v24  ;;  %522 = vmatmul.bf16.vlgmr.msra.gmra.mxu1 %v279_v24  ;;  %v249_v34 = vmul.f32 %v196_v26, %v1050_v33  ;;  %v274_v33 = vadd.f32 %v1098_v12, %v262_v43  ;;  %v216_v49 = vsel %vm215_vm2, %v837_v15, %v212_v47 }
 0x12b   :  { %551 = vmatmul.bf16.vlgmr.msra.gmra.mxu2 %v279_v24  ;;  %580 = vmatmul.bf16.vlgmr.msra.gmra.mxu3 %v279_v24  ;;  %v220_v35 = vmul.f32 0.5, %v219_v27  ;;  %v251_v51 = vmul.f32 %v216_v49, %v1048_v32 }
 0x12c   :  { %v261_v39 = vmul.f32 %v1091_v5, %v249_v34 }
 0x12d   :  { %v221_v42 = vsub.f32 1.5, %v220_v35  ;;  %v263_v52 = vmul.f32 %v1091_v5, %v251_v51 }
 0x12e   :  { %v273_v45 = vadd.f32 %v1098_v12, %v261_v39 }
 0x12f   :  { %v222_v46 = vmul.f32 %v839_v17, %v221_v42  ;;  %v275_v54 = vadd.f32 %v1098_v12, %v263_v52 }
 0x130   :  { %v280_v25 = vpack.c.bf16 %v274_v33, %v273_v45 }
 0x131   :  { %v226_v48 = vsel %vm225_vm1, %v839_v17, %v222_v46  ;;  %v315_v17 = vld [vmem:[#allocation8] sm:$0xf] }
 0x132   :  { %v252_v50 = vmul.f32 %v226_v48, %v1063_v41  ;;  %v841_v41 = vpop.eup %840  ;;  %v1131_v19 = vperm.slane %v315_v17, 1  ;;  %v1135_v23 = vperm.slane %v315_v17, 2 }
 0x133   :  { %v228_v32 = vmul.f32 %v841_v41, %v165_v58  ;;  %vm234_vm4 = vweird.f32 %v841_v41 }
 0x134   :  { %v264_v30 = vmul.f32 %v1091_v5, %v252_v50  ;;  %vm235_vm5 = vmor %vm233_vm3, %vm234_vm4 }
 0x135   :  { %v229_v59 = vmul.f32 %v841_v41, %v228_v32 }
 0x136   :  { %v276_v53 = vadd.f32 %v1098_v12, %v264_v30 }
 0x137   :  { %v230_v63 = vmul.f32 0.5, %v229_v59 }
 0x138   :  { %v281_v55 = vpack.c.bf16 %v276_v53, %v275_v54 }
 0x139   :  { %v231_v0 = vsub.f32 1.5, %v230_v63 }
 0x13a   :  { %498 = vmatmul.bf16.gmra.mxu0 %v280_v25  ;;  %527 = vmatmul.bf16.gmra.mxu1 %v280_v25 }
 0x13b   :  { %556 = vmatmul.bf16.gmra.mxu2 %v280_v25  ;;  %585 = vmatmul.bf16.gmra.mxu3 %v280_v25  ;;  %v232_v2 = vmul.f32 %v841_v41, %v231_v0 }
 0x13d   :  { %v236_v6 = vsel %vm235_vm5, %v841_v41, %v232_v2 }
 0x13e   :  { %v253_v9 = vmul.f32 %v236_v6, %v1054_v36  ;;  %v1129_v36 = vperm.slane %v315_v17, 0 }
 0x140   :  { %v265_v18 = vmul.f32 %v1091_v5, %v253_v9 }
 0x142   :  { %v277_v15 = vadd.f32 %v1098_v12, %v265_v18 }
 0x14a   :  { %503 = vmatmul.bf16.gmra.mxu0 %v281_v55  ;;  %532 = vmatmul.bf16.gmra.mxu1 %v281_v55 }
 0x14b   :  { %561 = vmatmul.bf16.gmra.mxu2 %v281_v55  ;;  %590 = vmatmul.bf16.gmra.mxu3 %v281_v55 }
 0x185   :  { %v150_v60 = vpop.xlane.xlu0 %149 }
 0x186   :  { %v158_v61 = vmul.f32 %v150_v60, %v1027_v13 }
 0x188   :  { %v166_v62 = vadd.f32 1e-05, %v158_v61 }
 0x18a   :  { %842 = vrsqrt.f32 %v166_v62  ;;  %vm243_vm7 = vweird.f32 %v166_v62 }
 0x190   :  { %v843_v1 = vpop.eup %842 }
 0x191   :  { %v238_v3 = vmul.f32 %v843_v1, %v166_v62  ;;  %vm244_vm6 = vweird.f32 %v843_v1 }
 0x192   :  { %vm245_vm8 = vmor %vm243_vm7, %vm244_vm6 }
 0x193   :  { %v239_v4 = vmul.f32 %v843_v1, %v238_v3 }
 0x195   :  { %v240_v7 = vmul.f32 0.5, %v239_v4 }
 0x197   :  { %v241_v8 = vsub.f32 1.5, %v240_v7 }
 0x199   :  { %v242_v10 = vmul.f32 %v843_v1, %v241_v8 }
 0x19b   :  { %v246_v13 = vsel %vm245_vm8, %v843_v1, %v242_v10 }
 0x19c   :  { %v254_v11 = vmul.f32 %v246_v13, %v1074_v40 }
 0x19e   :  { %v266_v14 = vmul.f32 %v1091_v5, %v254_v11 }
 0x1a0   :  { %v278_v16 = vadd.f32 %v1098_v12, %v266_v14  ;;  %v1137_v12 = vperm.slane %v315_v17, 3 }
 0x1a2   :  { %v282_v28 = vpack.c.bf16 %v278_v16, %v277_v15 }
 0x1a4   :  { %508 = vmatmul.bf16.gmra.mxu0 %v282_v28  ;;  %537 = vmatmul.bf16.gmra.mxu1 %v282_v28 }
 0x1a5   :  { %566 = vmatmul.bf16.gmra.mxu2 %v282_v28  ;;  %595 = vmatmul.bf16.gmra.mxu3 %v282_v28 }
 0x1a7   :  { %v494_v20 = vpop.f32.mrf.mxu0  ;;  %v523_v40 = vpop.f32.mrf.mxu1 }
 0x1a8   :  { %v495_v21 = vadd.f32 %v494_v20, %v1129_v36  ;;  %v524_v5 = vadd.f32 %v523_v40, %v1131_v19 }
 0x1aa   :  { %v601_v22 = vpack.c.bf16 %v524_v5, %v495_v21 }
 0x1ac   :  { %617 = vst [vmem:[#allocation10] sm:$0xff] %v601_v22 }
 0x1ae   :  { %v552_v24 = vpop.f32.mrf.mxu2  ;;  %v581_v26 = vpop.f32.mrf.mxu3 }
 0x1af   :  { %v553_v27 = vadd.f32 %v552_v24, %v1135_v23  ;;  %v582_v29 = vadd.f32 %v581_v26, %v1137_v12  ;;  %v496_v31 = vpop.f32.mrf.mxu0  ;;  %v525_v34 = vpop.f32.mrf.mxu1 }
 0x1b0   :  { %v497_v35 = vadd.f32 %v496_v31, %v1129_v36  ;;  %v526_v37 = vadd.f32 %v525_v34, %v1131_v19 }
 0x1b1   :  { %v602_v38 = vpack.c.bf16 %v582_v29, %v553_v27 }
 0x1b2   :  { %v603_v39 = vpack.c.bf16 %v526_v37, %v497_v35 }
 0x1b3   :  { %618 = vst [vmem:[#allocation10 + $0x8] sm:$0xff] %v602_v38 }
 0x1b4   :  { %619 = vst [vmem:[#allocation10 + $0x10] sm:$0xff] %v603_v39 }
 0x1b6   :  { %v554_v42 = vpop.f32.mrf.mxu2  ;;  %v583_v43 = vpop.f32.mrf.mxu3 }
 0x1b7   :  { %v555_v44 = vadd.f32 %v554_v42, %v1135_v23  ;;  %v584_v45 = vadd.f32 %v583_v43, %v1137_v12  ;;  %v499_v46 = vpop.f32.mrf.mxu0  ;;  %v528_v33 = vpop.f32.mrf.mxu1 }
 0x1b8   :  { %v500_v47 = vadd.f32 %v499_v46, %v1129_v36  ;;  %v529_v25 = vadd.f32 %v528_v33, %v1131_v19 }
 0x1b9   :  { %v604_v48 = vpack.c.bf16 %v584_v45, %v555_v44 }
 0x1ba   :  { %v605_v49 = vpack.c.bf16 %v529_v25, %v500_v47 }
 0x1bb   :  { %620 = vst [vmem:[#allocation10 + $0x18] sm:$0xff] %v604_v48 }
 0x1bc   :  { %621 = vst [vmem:[#allocation10 + $0x20] sm:$0xff] %v605_v49 }
 0x1be   :  { %v557_v50 = vpop.f32.mrf.mxu2  ;;  %v586_v51 = vpop.f32.mrf.mxu3 }
 0x1bf   :  { %v558_v30 = vadd.f32 %v557_v50, %v1135_v23  ;;  %v587_v52 = vadd.f32 %v586_v51, %v1137_v12  ;;  %v501_v53 = vpop.f32.mrf.mxu0  ;;  %v530_v54 = vpop.f32.mrf.mxu1 }
 0x1c0   :  { %v502_v55 = vadd.f32 %v501_v53, %v1129_v36  ;;  %v531_v56 = vadd.f32 %v530_v54, %v1131_v19 }
 0x1c1   :  { %v606_v57 = vpack.c.bf16 %v587_v52, %v558_v30 }
 0x1c2   :  { %v607_v58 = vpack.c.bf16 %v531_v56, %v502_v55 }
 0x1c3   :  { %622 = vst [vmem:[#allocation10 + $0x28] sm:$0xff] %v606_v57 }
 0x1c4   :  { %623 = vst [vmem:[#allocation10 + $0x30] sm:$0xff] %v607_v58 }
 0x1c6   :  { %v559_v41 = vpop.f32.mrf.mxu2  ;;  %v588_v32 = vpop.f32.mrf.mxu3 }
 0x1c7   :  { %v560_v59 = vadd.f32 %v559_v41, %v1135_v23  ;;  %v589_v60 = vadd.f32 %v588_v32, %v1137_v12  ;;  %v504_v61 = vpop.f32.mrf.mxu0  ;;  %v533_v62 = vpop.f32.mrf.mxu1 }
 0x1c8   :  { %v505_v63 = vadd.f32 %v504_v61, %v1129_v36  ;;  %v534_v0 = vadd.f32 %v533_v62, %v1131_v19 }
 0x1c9   :  { %v608_v1 = vpack.c.bf16 %v589_v60, %v560_v59 }
 0x1ca   :  { %v609_v2 = vpack.c.bf16 %v534_v0, %v505_v63 }
 0x1cb   :  { %624 = vst [vmem:[#allocation10 + $0x38] sm:$0xff] %v608_v1 }
 0x1cc   :  { %625 = vst [vmem:[#allocation10 + $0x40] sm:$0xff] %v609_v2 }
 0x1ce   :  { %v562_v3 = vpop.f32.mrf.mxu2  ;;  %v591_v4 = vpop.f32.mrf.mxu3 }
 0x1cf   :  { %v563_v6 = vadd.f32 %v562_v3, %v1135_v23  ;;  %v592_v7 = vadd.f32 %v591_v4, %v1137_v12  ;;  %v506_v8 = vpop.f32.mrf.mxu0  ;;  %v535_v9 = vpop.f32.mrf.mxu1 }
 0x1d0   :  { %v507_v10 = vadd.f32 %v506_v8, %v1129_v36  ;;  %v536_v13 = vadd.f32 %v535_v9, %v1131_v19 }
 0x1d1   :  { %v610_v11 = vpack.c.bf16 %v592_v7, %v563_v6 }
 0x1d2   :  { %v611_v18 = vpack.c.bf16 %v536_v13, %v507_v10 }
 0x1d3   :  { %626 = vst [vmem:[#allocation10 + $0x48] sm:$0xff] %v610_v11 }
 0x1d4   :  { %627 = vst [vmem:[#allocation10 + $0x50] sm:$0xff] %v611_v18 }
 0x1d6   :  { %v564_v14 = vpop.f32.mrf.mxu2  ;;  %v593_v15 = vpop.f32.mrf.mxu3 }
 0x1d7   :  { %v565_v16 = vadd.f32 %v564_v14, %v1135_v23  ;;  %v594_v28 = vadd.f32 %v593_v15, %v1137_v12 }
 0x1d9   :  { %v612_v17 = vpack.c.bf16 %v594_v28, %v565_v16 }
 0x1db   :  { %628 = vst [vmem:[#allocation10 + $0x58] sm:$0xff] %v612_v17 }
 0x221   :  { %v509_v20 = vpop.f32.mrf.mxu0  ;;  %v538_v40 = vpop.f32.mrf.mxu1 }
 0x222   :  { %v510_v21 = vadd.f32 %v509_v20, %v1129_v36  ;;  %v539_v5 = vadd.f32 %v538_v40, %v1131_v19 }
 0x224   :  { %v613_v22 = vpack.c.bf16 %v539_v5, %v510_v21 }
 0x226   :  { %629 = vst [vmem:[#allocation10 + $0x60] sm:$0xff] %v613_v22 }
 0x228   :  { %v567_v24 = vpop.f32.mrf.mxu2  ;;  %v596_v26 = vpop.f32.mrf.mxu3 }
 0x229   :  { %v568_v27 = vadd.f32 %v567_v24, %v1135_v23  ;;  %v597_v29 = vadd.f32 %v596_v26, %v1137_v12  ;;  %v511_v31 = vpop.f32.mrf.mxu0  ;;  %v540_v34 = vpop.f32.mrf.mxu1 }
 0x22a   :  { %v512_v35 = vadd.f32 %v511_v31, %v1129_v36  ;;  %v541_v37 = vadd.f32 %v540_v34, %v1131_v19 }
 0x22b   :  { %v614_v38 = vpack.c.bf16 %v597_v29, %v568_v27 }
 0x22c   :  { %v615_v39 = vpack.c.bf16 %v541_v37, %v512_v35 }
 0x22d   :  { %630 = vst [vmem:[#allocation10 + $0x68] sm:$0xff] %v614_v38 }
 0x22e   :  { %631 = vst [vmem:[#allocation10 + $0x70] sm:$0xff] %v615_v39 }
 0x230   :  { %v569_v42 = vpop.f32.mrf.mxu2  ;;  %v598_v43 = vpop.f32.mrf.mxu3 }
 0x231   :  { %v570_v44 = vadd.f32 %v569_v42, %v1135_v23  ;;  %v599_v45 = vadd.f32 %v598_v43, %v1137_v12 }
 0x233   :  { %v616_v46 = vpack.c.bf16 %v599_v45, %v570_v44 }
 0x235   :  { %632 = vst [vmem:[#allocation10 + $0x78] sm:$0xff] %v616_v46 }
 0x236   :  { %645 = dma.vmem_to_hbm [thread:$0]  %s638_s15, 2048, %s640_s18, [#allocation4], %s977_s11, %s977_s11, %s978_s12  }
 0x237   :  { %970 = dma.done.wait [#allocation4], 2048  }
 0x238   :  { %971 = vsyncadd [#allocation4], 4294965248 }
 0x239   :  { %650 = vsyncpa [#allocation3], 1 }
 0x23a   :  { %651 = vsyncpa [#allocation6], 1 }
 0x23b   :  { %652 = vsyncpa [#allocation9], 1 }
 0x23c   :  { %653 = vsyncpa [#allocation4], 1 }

</bundles_post_ra>
